<compile_context>
chip_gen: v6e
topology: v6e:2x2x1
jax: 0.10.0
libtpu: 0.0.40
codegen_flags: <defaults>
</compile_context>

<pallas_src>
import functools

import jax
import jax.numpy as jnp
from jax.experimental import pallas as pl
from jax.experimental.pallas import tpu as pltpu

BN_EPS = 1e-5


def _pick_vmem_limit():
    """Per-generation scoped-VMEM limit (bytes); conservative for unknown chips."""
    try:
        kind = jax.devices()[0].device_kind.lower()
    except Exception:  # pragma: no cover
        return 32 * 2**20
    if "v7" in kind:
        return 48 * 2**20        # 64 MiB physical VMEM per TensorCore
    if "v5" in kind or "v6" in kind:
        return 100 * 2**20       # 128 MiB physical VMEM
    return 32 * 2**20


def _phase1_vmem_bytes(th, wo, c4, cout):
    """Rough per-step VMEM footprint of phase 1 (double-buffered IO + temporaries)."""
    tm = th * wo
    main = th * (wo + 1) * c4 * 2
    halo = (wo + 1) * c4 * 2
    wts = (2 * c4 + c4 // 2 + c4 // 4) * cout * 2
    conv = cout * tm * 2
    stats = 2 * cout * 4
    temps = 4 * tm * c4 * 2 + main + 2 * tm * cout * 4
    return 2 * (main + halo + wts + conv + stats) + temps


def _pick_row_tile(ho, wo, c4, cout, budget_bytes):
    """Largest th with th | Ho and a lane-aligned flattened block
    ((th*Wo) % 128 == 0, or th == Ho => full-dim exemption) fitting the budget."""
    legal = [th for th in range(1, ho + 1)
             if ho % th == 0 and (th == ho or (th * wo) % 128 == 0)]
    fitting = [th for th in legal if _phase1_vmem_bytes(th, wo, c4, cout) <= budget_bytes]
    return max(fitting) if fitting else min(legal)


def _build_weights(conv_w):
    """Pack (Cout, Cin, 3, 3) into four matmul slabs matching the pixel-quad
    channel order (rh*2 + rw)*Cin + ci."""
    cout, cin = conv_w.shape[0], conv_w.shape[1]
    w = conv_w.astype(jnp.float32)
    # shift (0,0): taps kh,kw in {0,1} -> all four channel groups carry weight.
    w00 = jnp.transpose(w[:, :, 0:2, 0:2], (2, 3, 1, 0)).reshape(4 * cin, cout)
    # shift (0,+1): taps kh in {0,1}, kw=2 -> only rw=0 groups carry weight.
    w01h = jnp.transpose(w[:, :, 0:2, 2], (2, 1, 0))                  # (kh, ci, co)
    w01 = jnp.stack([w01h, jnp.zeros_like(w01h)], axis=1).reshape(4 * cin, cout)
    # shift (+1,0): taps kh=2, kw in {0,1} -> groups (rh=0, rw) = first 2*Cin chans.
    w10 = jnp.transpose(w[:, :, 2, 0:2], (2, 1, 0)).reshape(2 * cin, cout)
    # shift (+1,+1): tap (2,2) -> group (0,0) = first Cin channels.
    w11 = jnp.transpose(w[:, :, 2, 2], (1, 0))
    # Keep the MXU contraction dim >= 8 for tiny Cin by widening with zero rows
    # (the kernel slices its A operand to the weight's leading extent).
    if 2 * cin < 8:
        w10 = jnp.concatenate([w10, jnp.zeros((2 * cin, cout), w.dtype)], axis=0)
    if cin < 8:
        w11 = jnp.concatenate([w11, jnp.zeros((3 * cin, cout), w.dtype)], axis=0)
    return (w00.astype(jnp.bfloat16), w01.astype(jnp.bfloat16),
            w10.astype(jnp.bfloat16), w11.astype(jnp.bfloat16))


# ---------------------------------------------------------------------------
# Phase 1: direct stride-2 3x3 conv on the pixel-quad layout + partial BN stats.
# ---------------------------------------------------------------------------
def _conv_stats_kernel(main_ref, halo_ref, w00_ref, w01_ref, w10_ref, w11_ref,
                       conv_ref, stats_ref):
    """main_ref : (1, th, Wo+1, 4*Cin) bf16  rows [t*th, t*th+th) of xr
       halo_ref : (1, 1,  Wo+1, 4*Cin) bf16  row t*th+th of xr (next-row halo)
       conv_ref : (1, Cout, th*Wo)     bf16  conv intermediate, channel-major
       stats_ref: (1, 1, 2, Cout)      f32   per-tile [sum, sum-of-squares]"""
    th, wop1, c4 = main_ref.shape[1], main_ref.shape[2], main_ref.shape[3]
    wo = wop1 - 1
    tm = th * wo

    main = main_ref[0]                                            # (th, Wo+1, 4C)
    if th > 1:
        nxt = jnp.concatenate([main[1:], halo_ref[0]], axis=0)    # rows shifted by +1
    else:
        nxt = halo_ref[0]

    k10 = w10_ref.shape[0]
    k11 = w11_ref.shape[0]

    # The four (dh, dw) in {0,1}^2 shifted views; all 9 taps land on them.
    a00 = main[:, :wo, :].reshape(tm, c4)
    a01 = main[:, 1:, :].reshape(tm, c4)
    a10 = nxt[:, :wo, :k10].reshape(tm, k10)
    a11 = nxt[:, 1:, :k11].reshape(tm, k11)

    acc = jnp.dot(a00, w00_ref[...], preferred_element_type=jnp.float32)
    acc = acc + jnp.dot(a01, w01_ref[...], preferred_element_type=jnp.float32)
    acc = acc + jnp.dot(a10, w10_ref[...], preferred_element_type=jnp.float32)
    acc = acc + jnp.dot(a11, w11_ref[...], preferred_element_type=jnp.float32)

    # Per-tile partial BN statistics (two direct stores, no concat/relayout).
    stats_ref[0, 0, 0:1, :] = jnp.sum(acc, axis=0, keepdims=True)
    stats_ref[0, 0, 1:2, :] = jnp.sum(acc * acc, axis=0, keepdims=True)

    # Channel-major store: lane-dense along the spatial dim even for small Cout.
    conv_ref[0, :, :] = jnp.transpose(acc, (1, 0)).astype(conv_ref.dtype)


# ---------------------------------------------------------------------------
# Phase 2: folded BatchNorm (scale/shift) + ReLU; mem-bound elementwise pass.
# ---------------------------------------------------------------------------
def _bn_relu_kernel(conv_ref, scale_ref, shift_ref, out_ref):
    y = conv_ref[0].astype(jnp.float32) * scale_ref[...] + shift_ref[...]
    out_ref[0] = jnp.maximum(y, 0.0)


@functools.partial(jax.jit, static_argnames=("row_tile", "vmem_limit_bytes"))
def downsample_forward(x_nchw, conv_w, conv_b, bn_gamma, bn_beta, *,
                       row_tile=None, vmem_limit_bytes=None):
    """Conv2d(Cin, 2*Cin, 3, stride=2, pad=1) + train-mode BatchNorm2d + ReLU.

    x_nchw: (N, Cin, H, W) f32; conv_w: (Cout, Cin, 3, 3); returns (N, Cout, H/2, W/2) f32.
    conv_b is accepted for interface parity but unused: training-mode BN cancels it.
    """
    del conv_b  # cancelled exactly by batch-statistic BatchNorm
    n, cin, h, w = x_nchw.shape
    cout = conv_w.shape[0]
    if h % 2 or w % 2:
        # TODO(synk): odd H/W needs one extra zero row/col in the rearrangement.
        raise NotImplementedError("downsample_forward requires even H and W")
    ho, wo = h // 2, w // 2
    c4 = 4 * cin

    if vmem_limit_bytes is None:
        vmem_limit_bytes = _pick_vmem_limit()
    if row_tile is None:
        row_tile = _pick_row_tile(ho, wo, c4, cout, budget_bytes=vmem_limit_bytes // 2)
    th = row_tile
    if ho % th or (th != ho and (th * wo) % 128):
        raise ValueError(f"row_tile={th} must divide Ho={ho} with th*Wo % 128 == 0")
    tm = th * wo
    n_tiles = ho // th

    # --- single XLA layout pass: pad(1), cast bf16, pixel-quad rearrangement --
    # xr[n, i, j, (rh*2+rw)*Cin + ci] == x_padded[n, ci, 2i+rh, 2j+rw]
    xp = jnp.pad(x_nchw.astype(jnp.bfloat16), ((0, 0), (0, 0), (1, 1), (1, 1)))
    xr = xp.reshape(n, cin, ho + 1, 2, wo + 1, 2)
    xr = jnp.transpose(xr, (0, 2, 4, 3, 5, 1)).reshape(n, ho + 1, wo + 1, c4)

    w00, w01, w10, w11 = _build_weights(conv_w)
    k_total = w00.shape[0] + w01.shape[0] + w10.shape[0] + w11.shape[0]

    # --- phase 1: direct conv (4 on-chip matmuls) + per-tile partial stats ----
    p1_bytes = (xr.size * 2 + (w00.size + w01.size + w10.size + w11.size) * 2
                + n * cout * ho * wo * 2 + n * n_tiles * 2 * cout * 4)
    conv_cm, stats = pl.pallas_call(
        _conv_stats_kernel,
        grid=(n, n_tiles),
        in_specs=[
            pl.BlockSpec((1, th, wo + 1, c4), lambda b, t: (b, t, 0, 0)),
            pl.BlockSpec((1, 1, wo + 1, c4), lambda b, t: (b, (t + 1) * th, 0, 0)),
            pl.BlockSpec((w00.shape[0], cout), lambda b, t: (0, 0)),
            pl.BlockSpec((w01.shape[0], cout), lambda b, t: (0, 0)),
            pl.BlockSpec((w10.shape[0], cout), lambda b, t: (0, 0)),
            pl.BlockSpec((w11.shape[0], cout), lambda b, t: (0, 0)),
        ],
        out_specs=[
            pl.BlockSpec((1, cout, tm), lambda b, t: (b, 0, t)),
            pl.BlockSpec((1, 1, 2, cout), lambda b, t: (b, t, 0, 0)),
        ],
        out_shape=[
            jax.ShapeDtypeStruct((n, cout, ho * wo), jnp.bfloat16),
            jax.ShapeDtypeStruct((n, n_tiles, 2, cout), jnp.float32),
        ],
        compiler_params=pltpu.CompilerParams(
            dimension_semantics=("parallel", "parallel"),
            vmem_limit_bytes=vmem_limit_bytes,
        ),
        cost_estimate=pl.CostEstimate(
            flops=2 * n * ho * wo * k_total * cout,
            transcendentals=0,
            bytes_accessed=p1_bytes),
    )(xr, xr, w00, w01, w10, w11)

    # --- finalize BN statistics (tiny, plain JAX) -----------------------------
    totals = jnp.sum(stats, axis=(0, 1))                           # (2, Cout) f32
    m = jnp.float32(n * ho * wo)
    mean = totals[0] / m
    var = jnp.maximum(totals[1] / m - mean * mean, 0.0)
    gscale = bn_gamma.astype(jnp.float32) * jax.lax.rsqrt(var + BN_EPS)
    scale = gscale.reshape(cout, 1)
    shift = (bn_beta.astype(jnp.float32) - mean * gscale).reshape(cout, 1)

    # --- phase 2: folded BN + ReLU, channel-major, lane-dense loads/stores ----
    p2_bytes = n * cout * ho * wo * (2 + 4) + 2 * cout * 4
    out = pl.pallas_call(
        _bn_relu_kernel,
        grid=(n, n_tiles),
        in_specs=[
            pl.BlockSpec((1, cout, tm), lambda b, t: (b, 0, t)),
            pl.BlockSpec((cout, 1), lambda b, t: (0, 0)),
            pl.BlockSpec((cout, 1), lambda b, t: (0, 0)),
        ],
        out_specs=pl.BlockSpec((1, cout, tm), lambda b, t: (b, 0, t)),
        out_shape=jax.ShapeDtypeStruct((n, cout, ho * wo), jnp.float32),
        compiler_params=pltpu.CompilerParams(
            dimension_semantics=("parallel", "parallel"),
            vmem_limit_bytes=vmem_limit_bytes,
        ),
        cost_estimate=pl.CostEstimate(
            flops=3 * n * cout * ho * wo, transcendentals=0, bytes_accessed=p2_bytes),
    )(conv_cm, scale, shift)

    # Output is already channel-major (NCHW); the reshape is free.
    return out.reshape(n, cout, ho, wo)


def _reference(x_nchw, conv_w, conv_b, bn_gamma, bn_beta):
    """Pure-JAX f32 reference: Conv2d(3, s=2, p=1) + train-mode BatchNorm2d + ReLU."""
    x = x_nchw.astype(jnp.float32)
    conv = jax.lax.conv_general_dilated(
        x, conv_w.astype(jnp.float32), window_strides=(2, 2),
        padding=((1, 1), (1, 1)), dimension_numbers=("NCHW", "OIHW", "NCHW"),
        precision=jax.lax.Precision.HIGHEST)
    conv = conv + conv_b.astype(jnp.float32)[None, :, None, None]
    mean = jnp.mean(conv, axis=(0, 2, 3), keepdims=True)
    var = jnp.mean((conv - mean) ** 2, axis=(0, 2, 3), keepdims=True)
    y = (conv - mean) * jax.lax.rsqrt(var + BN_EPS)
    y = y * bn_gamma[None, :, None, None] + bn_beta[None, :, None, None]
    return jnp.maximum(y, 0.0)


if __name__ == "__main__":
    key = jax.random.PRNGKey(0)
    k_x, k_w, k_b, k_g, k_be, k_x2, k_w2 = jax.random.split(key, 7)

    # Config 1: toy size implied by the module (single row tile, th == Ho).
    N, Cin, H, W = 2, 4, 16, 16
    Cout = 2 * Cin
    x = jax.random.normal(k_x, (N, Cin, H, W), dtype=jnp.float32)
    conv_w = 0.1 * jax.random.normal(k_w, (Cout, Cin, 3, 3), dtype=jnp.float32)
    conv_b = 0.1 * jax.random.normal(k_b, (Cout,), dtype=jnp.float32)
    bn_gamma = 1.0 + 0.1 * jax.random.normal(k_g, (Cout,), dtype=jnp.float32)
    bn_beta = 0.1 * jax.random.normal(k_be, (Cout,), dtype=jnp.float32)

    out = jax.block_until_ready(downsample_forward(x, conv_w, conv_b, bn_gamma, bn_beta))
    ref = jax.block_until_ready(_reference(x, conv_w, conv_b, bn_gamma, bn_beta))
    assert out.shape == (N, Cout, H // 2, W // 2), out.shape
    assert jnp.allclose(out, ref, atol=3e-2, rtol=3e-2), float(jnp.max(jnp.abs(out - ref)))

    # Config 2: multi-tile grid (row_tile=8 over Ho=16) to exercise the cross-tile
    # halo row and the per-tile partial-stats reduction.
    N2, Cin2, H2, W2 = 2, 8, 32, 32
    Cout2 = 2 * Cin2
    x2 = jax.random.normal(k_x2, (N2, Cin2, H2, W2), dtype=jnp.float32)
    conv_w2 = 0.1 * jax.random.normal(k_w2, (Cout2, Cin2, 3, 3), dtype=jnp.float32)
    conv_b2 = jnp.zeros((Cout2,), jnp.float32)
    bn_gamma2 = jnp.ones((Cout2,), jnp.float32)
    bn_beta2 = jnp.zeros((Cout2,), jnp.float32)

    out2 = jax.block_until_ready(
        downsample_forward(x2, conv_w2, conv_b2, bn_gamma2, bn_beta2, row_tile=8))
    ref2 = jax.block_until_ready(_reference(x2, conv_w2, conv_b2, bn_gamma2, bn_beta2))
    assert out2.shape == (N2, Cout2, H2 // 2, W2 // 2), out2.shape
    assert jnp.allclose(out2, ref2, atol=3e-2, rtol=3e-2), float(jnp.max(jnp.abs(out2 - ref2)))

    print("KERNEL_OK")
</pallas_src>

<mosaic_0001>
module attributes {stable_mosaic.version = 11 : i64} {
  func.func @_conv_stats_kernel(%arg0: i32, %arg1: i32, %arg2: memref<1x8x9x16xbf16, #tpu.memory_space<vmem>>, %arg3: memref<1x1x9x16xbf16, #tpu.memory_space<vmem>>, %arg4: memref<16x8xbf16, #tpu.memory_space<vmem>>, %arg5: memref<16x8xbf16, #tpu.memory_space<vmem>>, %arg6: memref<8x8xbf16, #tpu.memory_space<vmem>>, %arg7: memref<16x8xbf16, #tpu.memory_space<vmem>>, %arg8: memref<1x8x64xbf16, #tpu.memory_space<vmem>>, %arg9: memref<1x1x2x8xf32, #tpu.memory_space<vmem>>) attributes {dimension_semantics = [#tpu.dimension_semantics<parallel>, #tpu.dimension_semantics<parallel>], iteration_bounds = array<i64: 2, 1>, scalar_prefetch = 0 : i64, scratch_operands = 0 : i64, tpu.core_type = #tpu.core_type<tc>, window_params = [{transform_indices = @transform_0, window_bounds = array<i64: 1, 8, 9, 16>}, {transform_indices = @transform_1, window_bounds = array<i64: 1, 1, 9, 16>}, {pipeline_mode = #tpu.pipeline_mode<synchronous>, transform_indices = @transform_2, window_bounds = array<i64: 16, 8>}, {pipeline_mode = #tpu.pipeline_mode<synchronous>, transform_indices = @transform_3, window_bounds = array<i64: 16, 8>}, {pipeline_mode = #tpu.pipeline_mode<synchronous>, transform_indices = @transform_4, window_bounds = array<i64: 8, 8>}, {pipeline_mode = #tpu.pipeline_mode<synchronous>, transform_indices = @transform_5, window_bounds = array<i64: 16, 8>}, {transform_indices = @transform_6, window_bounds = array<i64: 1, 8, 64>}, {transform_indices = @transform_7, window_bounds = array<i64: 1, 1, 2, 8>}]} {
    %c0 = arith.constant 0 : index
    %c0_0 = arith.constant 0 : index
    %c0_1 = arith.constant 0 : index
    %c0_2 = arith.constant 0 : index
    %0 = vector.load %arg2[%c0, %c0_0, %c0_1, %c0_2] : memref<1x8x9x16xbf16, #tpu.memory_space<vmem>>, vector<1x8x9x16xbf16>
    %1 = vector.shape_cast %0 : vector<1x8x9x16xbf16> to vector<8x9x16xbf16>
    %2 = vector.extract_strided_slice %1 {offsets = [1, 0, 0], sizes = [7, 9, 16], strides = [1, 1, 1]} : vector<8x9x16xbf16> to vector<7x9x16xbf16>
    %c0_3 = arith.constant 0 : index
    %c0_4 = arith.constant 0 : index
    %c0_5 = arith.constant 0 : index
    %c0_6 = arith.constant 0 : index
    %3 = vector.load %arg3[%c0_3, %c0_4, %c0_5, %c0_6] : memref<1x1x9x16xbf16, #tpu.memory_space<vmem>>, vector<1x1x9x16xbf16>
    %4 = vector.shape_cast %3 : vector<1x1x9x16xbf16> to vector<1x9x16xbf16>
    %5 = tpu.concatenate %2, %4 in 0 : vector<7x9x16xbf16>, vector<1x9x16xbf16> -> vector<8x9x16xbf16>
    %6 = vector.extract_strided_slice %1 {offsets = [0, 0, 0], sizes = [8, 8, 16], strides = [1, 1, 1]} : vector<8x9x16xbf16> to vector<8x8x16xbf16>
    %7 = vector.shape_cast %6 : vector<8x8x16xbf16> to vector<64x16xbf16>
    %8 = vector.extract_strided_slice %1 {offsets = [0, 1, 0], sizes = [8, 8, 16], strides = [1, 1, 1]} : vector<8x9x16xbf16> to vector<8x8x16xbf16>
    %9 = vector.shape_cast %8 : vector<8x8x16xbf16> to vector<64x16xbf16>
    %10 = vector.extract_strided_slice %5 {offsets = [0, 0, 0], sizes = [8, 8, 8], strides = [1, 1, 1]} : vector<8x9x16xbf16> to vector<8x8x8xbf16>
    %11 = vector.shape_cast %10 : vector<8x8x8xbf16> to vector<64x8xbf16>
    %12 = vector.extract_strided_slice %5 {offsets = [0, 1, 0], sizes = [8, 8, 16], strides = [1, 1, 1]} : vector<8x9x16xbf16> to vector<8x8x16xbf16>
    %13 = vector.shape_cast %12 : vector<8x8x16xbf16> to vector<64x16xbf16>
    %c0_7 = arith.constant 0 : index
    %c0_8 = arith.constant 0 : index
    %14 = vector.load %arg4[%c0_7, %c0_8] : memref<16x8xbf16, #tpu.memory_space<vmem>>, vector<16x8xbf16>
    %cst = arith.constant dense<0.000000e+00> : vector<64x8xf32>
    %15 = tpu.matmul %7, %14, %cst {dimension_numbers = #tpu.dot_dimension_numbers<[1], [0], [0], [1], [0, 0, 1, 1], [], []>} : vector<64x16xbf16>, vector<16x8xbf16>, vector<64x8xf32> -> vector<64x8xf32>
    %c0_9 = arith.constant 0 : index
    %c0_10 = arith.constant 0 : index
    %16 = vector.load %arg5[%c0_9, %c0_10] : memref<16x8xbf16, #tpu.memory_space<vmem>>, vector<16x8xbf16>
    %cst_11 = arith.constant dense<0.000000e+00> : vector<64x8xf32>
    %17 = tpu.matmul %9, %16, %cst_11 {dimension_numbers = #tpu.dot_dimension_numbers<[1], [0], [0], [1], [0, 0, 1, 1], [], []>} : vector<64x16xbf16>, vector<16x8xbf16>, vector<64x8xf32> -> vector<64x8xf32>
    %18 = arith.addf %15, %17 : vector<64x8xf32>
    %c0_12 = arith.constant 0 : index
    %c0_13 = arith.constant 0 : index
    %19 = vector.load %arg6[%c0_12, %c0_13] : memref<8x8xbf16, #tpu.memory_space<vmem>>, vector<8x8xbf16>
    %cst_14 = arith.constant dense<0.000000e+00> : vector<64x8xf32>
    %20 = tpu.matmul %11, %19, %cst_14 {dimension_numbers = #tpu.dot_dimension_numbers<[1], [0], [0], [1], [0, 0, 1, 1], [], []>} : vector<64x8xbf16>, vector<8x8xbf16>, vector<64x8xf32> -> vector<64x8xf32>
    %21 = arith.addf %18, %20 : vector<64x8xf32>
    %c0_15 = arith.constant 0 : index
    %c0_16 = arith.constant 0 : index
    %22 = vector.load %arg7[%c0_15, %c0_16] : memref<16x8xbf16, #tpu.memory_space<vmem>>, vector<16x8xbf16>
    %cst_17 = arith.constant dense<0.000000e+00> : vector<64x8xf32>
    %23 = tpu.matmul %13, %22, %cst_17 {dimension_numbers = #tpu.dot_dimension_numbers<[1], [0], [0], [1], [0, 0, 1, 1], [], []>} : vector<64x16xbf16>, vector<16x8xbf16>, vector<64x8xf32> -> vector<64x8xf32>
    %24 = arith.addf %21, %23 : vector<64x8xf32>
    %cst_18 = arith.constant dense<0.000000e+00> : vector<8xf32>
    %25 = vector.multi_reduction <add>, %24, %cst_18 [0] : vector<64x8xf32> to vector<8xf32>
    %26 = vector.shape_cast %25 : vector<8xf32> to vector<1x8xf32>
    %c0_19 = arith.constant 0 : index
    %c0_20 = arith.constant 0 : index
    %c0_21 = arith.constant 0 : index
    %c0_22 = arith.constant 0 : index
    %27 = vector.load %arg9[%c0_19, %c0_20, %c0_21, %c0_22] : memref<1x1x2x8xf32, #tpu.memory_space<vmem>>, vector<1x1x1x8xf32>
    %28 = vector.shape_cast %27 : vector<1x1x1x8xf32> to vector<1x8xf32>
    %29 = vector.shape_cast %26 : vector<1x8xf32> to vector<1x1x1x8xf32>
    tpu.vector_store %arg9[%c0_19, %c0_20, %c0_21, %c0_22], %29 {strides = array<i32>} : memref<1x1x2x8xf32, #tpu.memory_space<vmem>>, vector<1x1x1x8xf32>,
    %30 = arith.mulf %24, %24 : vector<64x8xf32>
    %cst_23 = arith.constant dense<0.000000e+00> : vector<8xf32>
    %31 = vector.multi_reduction <add>, %30, %cst_23 [0] : vector<64x8xf32> to vector<8xf32>
    %32 = vector.shape_cast %31 : vector<8xf32> to vector<1x8xf32>
    %c0_24 = arith.constant 0 : index
    %c0_25 = arith.constant 0 : index
    %c1 = arith.constant 1 : index
    %c0_26 = arith.constant 0 : index
    %33 = vector.load %arg9[%c0_24, %c0_25, %c1, %c0_26] : memref<1x1x2x8xf32, #tpu.memory_space<vmem>>, vector<1x1x1x8xf32>
    %34 = vector.shape_cast %33 : vector<1x1x1x8xf32> to vector<1x8xf32>
    %35 = vector.shape_cast %32 : vector<1x8xf32> to vector<1x1x1x8xf32>
    tpu.vector_store %arg9[%c0_24, %c0_25, %c1, %c0_26], %35 {strides = array<i32>} : memref<1x1x2x8xf32, #tpu.memory_space<vmem>>, vector<1x1x1x8xf32>,
    %36 = tpu.transpose %24, [1, 0] : vector<64x8xf32> -> vector<8x64xf32>
    %37 = arith.truncf %36 : vector<8x64xf32> to vector<8x64xbf16>
    %c0_27 = arith.constant 0 : index
    %c0_28 = arith.constant 0 : index
    %c0_29 = arith.constant 0 : index
    %38 = vector.load %arg8[%c0_27, %c0_28, %c0_29] : memref<1x8x64xbf16, #tpu.memory_space<vmem>>, vector<1x8x64xbf16>
    %39 = vector.shape_cast %38 : vector<1x8x64xbf16> to vector<8x64xbf16>
    %40 = vector.shape_cast %37 : vector<8x64xbf16> to vector<1x8x64xbf16>
    tpu.vector_store %arg8[%c0_27, %c0_28, %c0_29], %40 {strides = array<i32>} : memref<1x8x64xbf16, #tpu.memory_space<vmem>>, vector<1x8x64xbf16>,
    return
  }
  func.func @transform_0(%arg0: i32, %arg1: i32) -> (i32, i32, i32, i32) {
    %c0_i32 = arith.constant 0 : i32
    %c0_i32_0 = arith.constant 0 : i32
    %c0_i32_1 = arith.constant 0 : i32
    return %arg0, %arg1, %c0_i32, %c0_i32_0 : i32, i32, i32, i32
  }
  func.func @transform_1(%arg0: i32, %arg1: i32) -> (i32, i32, i32, i32) {
    %c1_i32 = arith.constant 1 : i32
    %0 = arith.addi %arg1, %c1_i32 : i32
    %c8_i32 = arith.constant 8 : i32
    %1 = arith.muli %0, %c8_i32 : i32
    %c0_i32 = arith.constant 0 : i32
    %c0_i32_0 = arith.constant 0 : i32
    %c0_i32_1 = arith.constant 0 : i32
    return %arg0, %1, %c0_i32, %c0_i32_0 : i32, i32, i32, i32
  }
  func.func @transform_2(%arg0: i32, %arg1: i32) -> (i32, i32) {
    %c0_i32 = arith.constant 0 : i32
    %c0_i32_0 = arith.constant 0 : i32
    %c0_i32_1 = arith.constant 0 : i32
    return %c0_i32, %c0_i32_0 : i32, i32
  }
  func.func @transform_3(%arg0: i32, %arg1: i32) -> (i32, i32) {
    %c0_i32 = arith.constant 0 : i32
    %c0_i32_0 = arith.constant 0 : i32
    %c0_i32_1 = arith.constant 0 : i32
    return %c0_i32, %c0_i32_0 : i32, i32
  }
  func.func @transform_4(%arg0: i32, %arg1: i32) -> (i32, i32) {
    %c0_i32 = arith.constant 0 : i32
    %c0_i32_0 = arith.constant 0 : i32
    %c0_i32_1 = arith.constant 0 : i32
    return %c0_i32, %c0_i32_0 : i32, i32
  }
  func.func @transform_5(%arg0: i32, %arg1: i32) -> (i32, i32) {
    %c0_i32 = arith.constant 0 : i32
    %c0_i32_0 = arith.constant 0 : i32
    %c0_i32_1 = arith.constant 0 : i32
    return %c0_i32, %c0_i32_0 : i32, i32
  }
  func.func @transform_6(%arg0: i32, %arg1: i32) -> (i32, i32, i32) {
    %c0_i32 = arith.constant 0 : i32
    %c0_i32_0 = arith.constant 0 : i32
    return %arg0, %c0_i32, %arg1 : i32, i32, i32
  }
  func.func @transform_7(%arg0: i32, %arg1: i32) -> (i32, i32, i32, i32) {
    %c0_i32 = arith.constant 0 : i32
    %c0_i32_0 = arith.constant 0 : i32
    %c0_i32_1 = arith.constant 0 : i32
    return %arg0, %arg1, %c0_i32, %c0_i32_0 : i32, i32, i32, i32
  }
}

module attributes {stable_mosaic.version = 11 : i64} {
  func.func @_bn_relu_kernel(%arg0: i32, %arg1: i32, %arg2: memref<1x8x64xbf16, #tpu.memory_space<vmem>>, %arg3: memref<8x1xf32, #tpu.memory_space<vmem>>, %arg4: memref<8x1xf32, #tpu.memory_space<vmem>>, %arg5: memref<1x8x64xf32, #tpu.memory_space<vmem>>) attributes {dimension_semantics = [#tpu.dimension_semantics<parallel>, #tpu.dimension_semantics<parallel>], iteration_bounds = array<i64: 2, 1>, scalar_prefetch = 0 : i64, scratch_operands = 0 : i64, tpu.core_type = #tpu.core_type<tc>, window_params = [{transform_indices = @transform_0, window_bounds = array<i64: 1, 8, 64>}, {pipeline_mode = #tpu.pipeline_mode<synchronous>, transform_indices = @transform_1, window_bounds = array<i64: 8, 1>}, {pipeline_mode = #tpu.pipeline_mode<synchronous>, transform_indices = @transform_2, window_bounds = array<i64: 8, 1>}, {transform_indices = @transform_3, window_bounds = array<i64: 1, 8, 64>}]} {
    %c0 = arith.constant 0 : index
    %c0_0 = arith.constant 0 : index
    %c0_1 = arith.constant 0 : index
    %0 = vector.load %arg2[%c0, %c0_0, %c0_1] : memref<1x8x64xbf16, #tpu.memory_space<vmem>>, vector<1x8x64xbf16>
    %1 = vector.shape_cast %0 : vector<1x8x64xbf16> to vector<8x64xbf16>
    %2 = arith.extf %1 : vector<8x64xbf16> to vector<8x64xf32>
    %c0_2 = arith.constant 0 : index
    %c0_3 = arith.constant 0 : index
    %3 = vector.load %arg3[%c0_2, %c0_3] : memref<8x1xf32, #tpu.memory_space<vmem>>, vector<8x1xf32>
    %4 = vector.broadcast %3 : vector<8x1xf32> to vector<8x64xf32>
    %5 = arith.mulf %2, %4 : vector<8x64xf32>
    %c0_4 = arith.constant 0 : index
    %c0_5 = arith.constant 0 : index
    %6 = vector.load %arg4[%c0_4, %c0_5] : memref<8x1xf32, #tpu.memory_space<vmem>>, vector<8x1xf32>
    %7 = vector.broadcast %6 : vector<8x1xf32> to vector<8x64xf32>
    %8 = arith.addf %5, %7 : vector<8x64xf32>
    %cst = arith.constant 0.000000e+00 : f32
    %9 = vector.broadcast %cst : f32 to vector<8x64xf32>
    %10 = arith.maximumf %8, %9 : vector<8x64xf32>
    %c0_6 = arith.constant 0 : index
    %c0_7 = arith.constant 0 : index
    %c0_8 = arith.constant 0 : index
    %11 = vector.load %arg5[%c0_6, %c0_7, %c0_8] : memref<1x8x64xf32, #tpu.memory_space<vmem>>, vector<1x8x64xf32>
    %12 = vector.shape_cast %11 : vector<1x8x64xf32> to vector<8x64xf32>
    %13 = vector.shape_cast %10 : vector<8x64xf32> to vector<1x8x64xf32>
    tpu.vector_store %arg5[%c0_6, %c0_7, %c0_8], %13 {strides = array<i32>} : memref<1x8x64xf32, #tpu.memory_space<vmem>>, vector<1x8x64xf32>,
    return
  }
  func.func @transform_0(%arg0: i32, %arg1: i32) -> (i32, i32, i32) {
    %c0_i32 = arith.constant 0 : i32
    %c0_i32_0 = arith.constant 0 : i32
    return %arg0, %c0_i32, %arg1 : i32, i32, i32
  }
  func.func @transform_1(%arg0: i32, %arg1: i32) -> (i32, i32) {
    %c0_i32 = arith.constant 0 : i32
    %c0_i32_0 = arith.constant 0 : i32
    %c0_i32_1 = arith.constant 0 : i32
    return %c0_i32, %c0_i32_0 : i32, i32
  }
  func.func @transform_2(%arg0: i32, %arg1: i32) -> (i32, i32) {
    %c0_i32 = arith.constant 0 : i32
    %c0_i32_0 = arith.constant 0 : i32
    %c0_i32_1 = arith.constant 0 : i32
    return %c0_i32, %c0_i32_0 : i32, i32
  }
  func.func @transform_3(%arg0: i32, %arg1: i32) -> (i32, i32, i32) {
    %c0_i32 = arith.constant 0 : i32
    %c0_i32_0 = arith.constant 0 : i32
    return %arg0, %c0_i32, %arg1 : i32, i32, i32
  }
}

</mosaic_0001>

<bundles_post_ra>
// kernel: downsample_forward.3
= control target key start
LH: loop header
LB: loop body
LE: loop exit
PB: predicated region body
PF: predicated region fallthrough
CT: control target
= control target key end

     0   :  { %s370_s12 = smov 0   ;;  %s372_s13 = smov 0   ;;  %s406_s0 = inlined_call_operand.vmem [shape: bf16[2,8,64], index: 0, kind: input, shape index: {}]   ;;  %s407_s1 = inlined_call_operand.vmem [shape: f32[8,1], index: 1, kind: input, shape index: {}]   ;;  %s408_s2 = inlined_call_operand.vmem [shape: f32[8,1], index: 2, kind: input, shape index: {}]   ;;  %s409_s3 = inlined_call_operand.vmem [shape: f32[2,8,64], index: 3, kind: output, shape index: {}]  }
   0x1   :  { %s374_s14 = smov 0  }
   0x2 LB: > { %s25_s15 = sadd.s32 1, %s343_s13  ;;  %p294_p0 = scmp.ge.s32.totalorder %s347_s14, 1  ;;  %s347_s14 = sphi %s374_s14, %s13_s14   ;;  %s343_s13 = sphi %s372_s13, %s411_s13   ;;  %s339_s12 = sphi %s370_s12, %s410_s12  }
   0x3   : > { %p27_p1 = scmp.ge.s32.totalorder %s25_s15, 2  ;;  %p155_p2 = scmp.lt.s32.totalorder %s347_s14, 3 }
   0x5   : > { %s413_s15 = smov (%p27_p1, %s25_s15), 0  ;;  %p156_p3 = pnand %p294_p0, %p155_p2 }
   0x6   : > { %p183_p4 = scmp.lt.s32.totalorder (!%p156_p3), %s339_s12, 1 }
   0x7   : > { %159 = sbr.rel (%p156_p3) target bundleno = 147 (0x93), region = 32 }
   0xc   : > { %v199_v0 = vld [vmem:[%s407_s1] sm:$0xff]  ;;  %v349_v1 = vmov 0   ;;  %s415_s12 = smov (!%p183_p4, %s339_s12), 1  ;;  %vm214_vm0 = vcmask 523264  }
   0xd   : > { %324 = vset.pattern.permute.xlu0 %v349_v1  ;;  %v206_v2 = vld [vmem:[%s408_s2] sm:$0xff]  ;;  %s295_s20 = sshll.u32 %s415_s12, 2  ;;  %s296_s24 = sshll.u32 %s415_s12, 3 }
   0xe   : > { %202 = vperm.xlu0 %324, %v199_v0   ;;  %s189_s23 = scalar_lea.vmem %s406_s0, %s295_s20  ;;  %s196_s27 = scalar_lea.vmem %s409_s3, %s296_s24 }
   0xf   : > { %v197_v3 = vld [vmem:[%s189_s23] sm:$0xf] }
  0x10   : > { %v198_v4 = vunpack.c.l.bf16 %v197_v3 }
  0x12   : > { %209 = vperm.xlu0 %324, %v206_v2  }
  0x89   : > { %v203_v5 = vpop.permute.xlu0 %202 }
  0x8a   : > { %v205_v6 = vmul.f32 %v203_v5, %v198_v4 }
  0x8d   : > { %v210_v7 = vpop.permute.xlu0 %209 }
  0x8e   : > { %v212_v8 = vadd.f32 %v210_v7, %v205_v6 }
  0x90   : > { %v213_v9 = vmax.f32 %v212_v8, 0.0 }
  0x92   : > { %215 = vst.msk [vmem:[%s196_s27] sm:$0xff] %vm214_vm0, %v213_v9 }
  0x93 PF: > { %s13_s14 = sadd.s32 1, %s347_s14   ;;  %s410_s12 = smov %s343_s13 }
  0x94   : > { %p10_p5 = scmp.ge.s32.totalorder %s13_s14, 4   ;;  %s411_s13 = smov %s413_s15 }
  0x96   :  { %12 = sbr.rel (!%p10_p5) target bundleno = 2 (0x2), region = 62 }

// kernel: downsample_forward.2
= control target key start
LH: loop header
LB: loop body
LE: loop exit
PB: predicated region body
PF: predicated region fallthrough
CT: control target
= control target key end

     0   :  { %s1395_s24 = smov 0   ;;  %s1397_s25 = smov 0   ;;  %s1575_s0 = inlined_call_operand.vmem [shape: bf16[2,9,9,16], index: 0, kind: input, shape index: {}, may-alias: {0,1}]   ;;  %s1576_s1 = inlined_call_operand.vmem [shape: bf16[2,9,9,16], index: 1, kind: input, shape index: {}, may-alias: {0,1}]   ;;  %s1577_s2 = inlined_call_operand.vmem [shape: bf16[16,8], index: 2, kind: input, shape index: {}]   ;;  %s1578_s3 = inlined_call_operand.vmem [shape: bf16[16,8], index: 3, kind: input, shape index: {}]   ;;  %s1579_s4 = inlined_call_operand.vmem [shape: bf16[8,8], index: 4, kind: input, shape index: {}]   ;;  %s1580_s5 = inlined_call_operand.vmem [shape: bf16[16,8], index: 5, kind: input, shape index: {}]   ;;  %s1581_s6 = inlined_call_operand.vmem [shape: bf16[2,8,64], index: 6, kind: output, shape index: {0}]   ;;  %s1582_s7 = inlined_call_operand.vmem [shape: f32[2,1,2,8], index: 7, kind: output, shape index: {1}]  }
   0x1   :  { %s1399_s26 = smov 0  }
   0x2 LB: > { %s30_s27 = sadd.s32 1, %s1349_s25  ;;  %p1188_p0 = scmp.ge.s32.totalorder %s1353_s26, 1  ;;  %s1353_s26 = sphi %s1399_s26, %s18_s26   ;;  %s1349_s25 = sphi %s1397_s25, %s1586_s25   ;;  %s1345_s24 = sphi %s1395_s24, %s1585_s24  }
   0x3   : > { %p32_p1 = scmp.ge.s32.totalorder %s30_s27, 2  ;;  %p298_p2 = scmp.lt.s32.totalorder %s1353_s26, 3 }
   0x5   : > { %s1588_s27 = smov (%p32_p1, %s30_s27), 0  ;;  %p299_p3 = pnand %p1188_p0, %p298_p2 }
   0x6   : > { %p366_p4 = scmp.lt.s32.totalorder (!%p299_p3), %s1345_s24, 1 }
   0x7   : > { %302 = sbr.rel (%p299_p3) target bundleno = 378 (0x17a), region = 44 }
   0xc   : > { %v1321_v0 = vld [vmem:[%s1577_s2] sm:$0xff]   ;;  %s1590_s24 = smov (!%p366_p4, %s1345_s24), 1  ;;  %vm779_vm0 = vcmask 1043456   ;;  %vm578_vm1 = vcmask 130048   ;;  %vm427_vm2 = vsmask.f32 3328 }
   0xd   : > { %v1322_v1 = vld [vmem:[%s1578_s3] sm:$0xff]   ;;  %1262 = vmatprep.subr.bf16.mxu1 %v1321_v0  ;;  %s1293_s11 = smul.u32 72, %s1590_s24  ;;  %vm428_vm3 = vsmask.f32 7440  ;;  %vm766_vm5 = vcmask 64512   ;;  %s1192_s21 = sshll.u32 %s1590_s24, 1 }
   0xe   : > { %1263 = vmatpush3.bf16.msra.mxu1 %v1321_v0  ;;  %1252 = vmatprep.subr.bf16.mxu0 %v1322_v1  ;;  %v1424_v2 = vld [vmem:[%s1579_s4] sm:$0xf]  ;;  %vm1465_vm4 = vmor %vm427_vm2, %vm428_vm3  ;;  %s407_s28 = scalar_lea.vmem %s1582_s7, %s1192_s21  ;;  %vm975_vm6 = vcmask 57344   ;;  %s1191_s29 = sshll.u32 %s1590_s24, 2  ;;  %vm1040_vm7 = vcmask 519168  }
   0xf   : > { %1253 = vmatpush3.bf16.msra.mxu0 %v1322_v1  ;;  %v1325_v3 = vld [vmem:[%s1580_s5] sm:$0xff]   ;;  %s1437_s16 = scalar_lea.vmem %s1575_s0, %s1293_s11  ;;  %s1231_s17 = sadd.s32 64, %s1293_s11 }
  0x10   : > { %1292 = vmatprep.subr.msk.bf16.mxu0 %vm779_vm0, %v1424_v2  ;;  %1282 = vmatprep.subr.bf16.mxu1 %v1325_v3  ;;  %v409_v4 = vld [vmem:[%s1437_s16] sm:$0xf]  ;;  %v1441_v5 = vld [vmem:[%s1437_s16 + $0x8] sm:$0xf]  ;;  %v1444_v6 = vld [vmem:[%s1437_s16 + $0x10] sm:$0xf]  ;;  %s391_s20 = scalar_lea.vmem %s1576_s1, %s1231_s17  ;;  %s400_s9 = scalar_lea.vmem %s1581_s6, %s1191_s29 }
  0x11   : > { %v431_v7 = vshrl.u32 %v409_v4, 16  ;;  %v434_v8 = vshll.u32 %v409_v4, 16  ;;  %v445_v9 = vshrl.u32 %v1441_v5, 16  ;;  %v448_v10 = vshll.u32 %v1441_v5, 16  ;;  %v1449_v11 = vld [vmem:[%s1437_s16 + $0x18] sm:$0xf] }
  0x12   : > { %v1202_v12 = vcombine.low %v409_v4, %v1441_v5  ;;  %v1203_v13 = vcombine.low %v1444_v6, %v1449_v11  ;;  %v410_v14 = vld [vmem:[%s1437_s16 + $0x4] sm:$0x1]  ;;  %v412_v15 = vld [vmem:[%s1437_s16 + $0xc] sm:$0x1]  ;;  %v414_v16 = vld [vmem:[%s1437_s16 + $0x14] sm:$0x1] }
  0x13   : > { %v433_v17 = vrot.slane %v431_v7, 4  ;;  %v436_v18 = vrot.slane %v434_v8, 5  ;;  %v440_v19 = vshll.u32 %v410_v14, 16  ;;  %v447_v20 = vrot.slane %v445_v9, 4  ;;  %v416_v23 = vld [vmem:[%s1437_s16 + $0x1c] sm:$0x1] }
  0x14   : > { %1264 = vmatprep.mubr.msk.bf16.mxu1 %vm578_vm1, %v1202_v12  ;;  %v450_v21 = vrot.slane %v448_v10, 5  ;;  %v454_v22 = vshll.u32 %v412_v15, 16  ;;  %v459_v25 = vshrl.u32 %v1444_v6, 16  ;;  %v462_v26 = vshll.u32 %v1444_v6, 16  ;;  %v1463_v28 = vld [vmem:[%s1437_s16 + $0x20] sm:$0xf] }
  0x15   : > { %1265 = vmatmul.mubr.msk.bf16.vlgmr.msra.gmra.mxu1 %vm578_vm1, %v1203_v13  ;;  %v437_v24 = vor.u32 %v436_v18, %v433_v17  ;;  %v468_v27 = vshll.u32 %v414_v16, 16  ;;  %v442_v30 = vrot.slane %v440_v19, 5  ;;  %v473_v33 = vshrl.u32 %v1449_v11, 16  ;;  %v418_v34 = vld [vmem:[%s1437_s16 + $0x24] sm:$0x1] }
  0x16   : > { %v451_v31 = vor.u32 %v450_v21, %v447_v20  ;;  %v456_v32 = vrot.slane %v454_v22, 5  ;;  %1283 = vmatpush3.bf16.msra.mxu1 %v1325_v3  ;;  %v461_v36 = vrot.slane %v459_v25, 4  ;;  %v464_v37 = vrot.slane %v462_v26, 5  ;;  %v1477_v47 = vld [vmem:[%s1437_s16 + $0x28] sm:$0xf] }
  0x17   : > { %v438_v35 = vrot.slane %v437_v24, 4  ;;  %v470_v38 = vrot.slane %v468_v27, 5  ;;  %v475_v40 = vrot.slane %v473_v33, 4  ;;  %v476_v41 = vshll.u32 %v1449_v11, 16  ;;  %v1482_v52 = vld [vmem:[%s1437_s16 + $0x30] sm:$0xf] }
  0x18   : > { %v452_v39 = vrot.slane %v451_v31, 4  ;;  %v482_v42 = vshll.u32 %v416_v23, 16  ;;  %v465_v44 = vor.u32 %v464_v37, %v461_v36  ;;  %v487_v45 = vshrl.u32 %v1463_v28, 16  ;;  %v1485_v57 = vld [vmem:[%s1437_s16 + $0x38] sm:$0xf] }
  0x19   : > { %v443_v43 = vsel %vm1465_vm4, %v438_v35, %v442_v30  ;;  %v490_v46 = vshll.u32 %v1463_v28, 16  ;;  %v478_v49 = vrot.slane %v476_v41, 5  ;;  %v496_v51 = vshll.u32 %v418_v34, 16  ;;  %v420_v3 = vld [vmem:[%s1437_s16 + $0x2c] sm:$0x1] }
  0x1a   : > { %v457_v48 = vsel %vm1465_vm4, %v452_v39, %v456_v32  ;;  %v484_v50 = vrot.slane %v482_v42, 5  ;;  %v466_v53 = vrot.slane %v465_v44, 4  ;;  %v489_v54 = vrot.slane %v487_v45, 4  ;;  %v422_v10 = vld [vmem:[%s1437_s16 + $0x34] sm:$0x1] }
  0x1b   : > { %v492_v55 = vrot.slane %v490_v46, 5  ;;  %v1193_v56 = vcombine.low %v443_v43, %v457_v48  ;;  %v479_v58 = vor.u32 %v478_v49, %v475_v40  ;;  %v498_v59 = vrot.slane %v496_v51, 5  ;;  %v424_v19 = vld [vmem:[%s1437_s16 + $0x3c] sm:$0x1]  ;;  %v425_v25 = vld [vmem:[%s391_s20] sm:$0xf] }
  0x1c   : > { %v501_v60 = vshrl.u32 %v1477_v47, 16  ;;  %v504_v61 = vshll.u32 %v1477_v47, 16  ;;  %v471_v62 = vsel %vm1465_vm4, %v466_v53, %v470_v38  ;;  %v1204_v0 = vcombine.low %v1463_v28, %v1477_v47 }
  0x1d   : > { %v493_v63 = vor.u32 %v492_v55, %v489_v54  ;;  %1254 = vmatprep.mubr.msk.bf16.mxu0 %vm578_vm1, %v1193_v56  ;;  %v515_v1 = vshrl.u32 %v1482_v52, 16  ;;  %v480_v4 = vrot.slane %v479_v58, 4  ;;  %v1219_v7 = vcombine.low %v457_v48, %v471_v62 }
  0x1e   : > { %v518_v8 = vshll.u32 %v1482_v52, 16  ;;  %v529_v9 = vshrl.u32 %v1485_v57, 16  ;;  %1268 = vmatprep.mubr.msk.bf16.mxu1 %vm578_vm1, %v1204_v0  ;;  %v532_v13 = vshll.u32 %v1485_v57, 16  ;;  %v1205_v14 = vcombine.low %v1482_v52, %v1485_v57 }
  0x1f   : > { %v494_v12 = vrot.slane %v493_v63, 4  ;;  %v503_v15 = vrot.slane %v501_v60, 4  ;;  %v485_v16 = vsel %vm1465_vm4, %v480_v4, %v484_v50  ;;  %v506_v17 = vrot.slane %v504_v61, 5 }
  0x20   : > { %v510_v18 = vshll.u32 %v420_v3, 16  ;;  %v517_v20 = vrot.slane %v515_v1, 4  ;;  %v1194_v21 = vcombine.low %v471_v62, %v485_v16  ;;  %v781_v22 = vsel %vm779_vm0, %v1424_v2, 0  ;;  %1269 = vmatmul.mubr.msk.bf16.gmra.mxu1 %vm578_vm1, %v1205_v14  ;;  %v426_v2 = vld [vmem:[%s391_s20 + $0x4] sm:$0x1] }
  0x21   : > { %v520_v23 = vrot.slane %v518_v8, 5  ;;  %v524_v24 = vshll.u32 %v422_v10, 16  ;;  %v499_v26 = vsel %vm1465_vm4, %v494_v12, %v498_v59  ;;  %v507_v27 = vor.u32 %v506_v17, %v503_v15  ;;  %1284 = vmatprep.mubr.msk.bf16.mxu1 %vm578_vm1, %v1219_v7 }
  0x22   : > { %v512_v30 = vrot.slane %v510_v18, 5  ;;  %v531_v31 = vrot.slane %v529_v9, 4  ;;  %1255 = vmatmul.mubr.msk.bf16.vlgmr.msra.gmra.mxu0 %vm578_vm1, %v1194_v21  ;;  %v534_v34 = vrot.slane %v532_v13, 5  ;;  %v538_v35 = vshll.u32 %v424_v19, 16 }
  0x23   : > { %v521_v32 = vor.u32 %v520_v23, %v517_v20  ;;  %v526_v33 = vrot.slane %v524_v24, 5  ;;  %v1220_v36 = vcombine.low %v485_v16, %v499_v26  ;;  %1273 = vmatpush3.bf16.msra.mxu0 %v781_v22  ;;  %v508_v37 = vrot.slane %v507_v27, 4 }
  0x24   : > { %v543_v38 = vshrl.u32 %v425_v25, 16  ;;  %v535_v40 = vor.u32 %v534_v34, %v531_v31  ;;  %v540_v41 = vrot.slane %v538_v35, 5  ;;  %v546_v42 = vshll.u32 %v425_v25, 16 }
  0x25   : > { %v522_v39 = vrot.slane %v521_v32, 4  ;;  %v513_v43 = vsel %vm1465_vm4, %v508_v37, %v512_v30  ;;  %v552_v45 = vshll.u32 %v426_v2, 16  ;;  %v1211_v54 = vcombine.low %v1441_v5, %v1444_v6 }
  0x26   : > { %v545_v44 = vrot.slane %v543_v38, 4  ;;  %v1195_v46 = vcombine.low %v499_v26, %v513_v43  ;;  %v536_v49 = vrot.slane %v535_v40, 4  ;;  %v548_v50 = vrot.slane %v546_v42, 5 }
  0x27   : > { %v527_v48 = vsel %vm1465_vm4, %v522_v39, %v526_v33  ;;  %v554_v55 = vrot.slane %v552_v45, 5  ;;  %v1212_v62 = vcombine.low %v1449_v11, %v1463_v28  ;;  %v1213_v5 = vcombine.low %v1477_v47, %v1482_v52 }
  0x28   : > { %v1221_v51 = vcombine.low %v513_v43, %v527_v48  ;;  %1258 = vmatprep.mubr.msk.bf16.mxu0 %vm578_vm1, %v1195_v46  ;;  %v541_v53 = vsel %vm1465_vm4, %v536_v49, %v540_v41  ;;  %1285 = vmatmul.mubr.msk.bf16.vlgmr.msra.gmra.mxu1 %vm578_vm1, %v1220_v36  ;;  %v549_v56 = vor.u32 %v548_v50, %v545_v44 }
  0x29   : > { %v1196_v58 = vcombine.low %v527_v48, %v541_v53  ;;  %v1214_v6 = vcombine.low %v1485_v57, %v425_v25 }
  0x2a   : > { %1288 = vmatprep.mubr.msk.bf16.mxu1 %vm578_vm1, %v1221_v51  ;;  %v550_v59 = vrot.slane %v549_v56, 4 }
  0x2b   : > { %1259 = vmatmul.mubr.msk.bf16.gmra.mxu0 %vm578_vm1, %v1196_v58 }
  0x2c   : > { %1274 = vmatprep.mubr.msk.bf16.mxu0 %vm766_vm5, %v1211_v54  ;;  %v555_v60 = vsel %vm1465_vm4, %v550_v59, %v554_v55 }
  0x2d   : > { %v1222_v61 = vcombine.low %v541_v53, %v555_v60 }
  0x30   : > { %1289 = vmatmul.mubr.msk.bf16.gmra.mxu1 %vm578_vm1, %v1222_v61 }
  0x33   : > { %1275 = vmatmul.mubr.msk.bf16.vlgmr.msra.gmra.mxu0 %vm766_vm5, %v1212_v62 }
  0x34   : > { %1278 = vmatprep.mubr.msk.bf16.mxu0 %vm766_vm5, %v1213_v5 }
  0x3b   : > { %1279 = vmatmul.mubr.msk.bf16.gmra.mxu0 %vm766_vm5, %v1214_v6 }
  0xd5   : > { %v1266_v63 = vpop.f32.mrf.mxu1 }
  0xd7   : > { %v728_v29 = vpop.f32.mrf.mxu1 }
  0xd9   : > { %v1267_v0 = vpop.f32.mrf.mxu1 }
  0xdb   : > { %v731_v1 = vpop.f32.mrf.mxu1 }
  0xe0   : > { %v1270_v3 = vpop.f32.mrf.mxu1 }
  0xe2   : > { %v1256_v4 = vpop.f32.mrf.mxu0  ;;  %v744_v11 = vpop.f32.mrf.mxu1 }
  0xe3   : > { %v737_v18 = vadd.f32 %v1266_v63, %v1256_v4 }
  0xe4   : > { %v625_v28 = vpop.f32.mrf.mxu0  ;;  %v1271_v7 = vpop.f32.mrf.mxu1 }
  0xe5   : > { %v729_v19 = vadd.f32 %v728_v29, %v625_v28 }
  0xe6   : > { %v1257_v47 = vpop.f32.mrf.mxu0  ;;  %v747_v52 = vpop.f32.mrf.mxu1 }
  0xe7   : > { %v740_v24 = vadd.f32 %v1267_v0, %v1257_v47 }
  0xe8   : > { %v628_v8 = vpop.f32.mrf.mxu0  ;;  %v1286_v9 = vpop.f32.mrf.mxu1 }
  0xe9   : > { %v732_v27 = vadd.f32 %v731_v1, %v628_v8 }
  0xea   : > { %v915_v12 = vpop.f32.mrf.mxu1 }
  0xeb   : > { %v1260_v10 = vpop.f32.mrf.mxu0 }
  0xec   : > { %v1287_v57 = vpop.f32.mrf.mxu1  ;;  %v753_v37 = vadd.f32 %v1270_v3, %v1260_v10 }
  0xed   : > { %v641_v13 = vpop.f32.mrf.mxu0 }
  0xee   : > { %v918_v17 = vpop.f32.mrf.mxu1  ;;  %v745_v2 = vadd.f32 %v744_v11, %v641_v13 }
  0xef   : > { %v1261_v14 = vpop.f32.mrf.mxu0 }
  0xf0   : > { %v1290_v21 = vpop.f32.mrf.mxu1  ;;  %v756_v42 = vadd.f32 %v1271_v7, %v1261_v14 }
  0xf1   : > { %v644_v15 = vpop.f32.mrf.mxu0 }
  0xf2   : > { %v931_v32 = vpop.f32.mrf.mxu1  ;;  %v748_v51 = vadd.f32 %v747_v52, %v644_v15 }
  0xf3   : > { %v1276_v16 = vpop.f32.mrf.mxu0 }
  0xf4   : > { %v850_v22 = vadd.f32 %v1276_v16, %v737_v18  ;;  %v1291_v41 = vpop.f32.mrf.mxu1 }
  0xf5   : > { %v817_v20 = vpop.f32.mrf.mxu0 }
  0xf6   : > { %v848_v23 = vadd.f32 %v817_v20, %v729_v19  ;;  %v948_v33 = vadd.f32 %v1286_v9, %v850_v22  ;;  %v934_v62 = vpop.f32.mrf.mxu1 }
  0xf7   : > { %v1277_v25 = vpop.f32.mrf.mxu0 }
  0xf8   : > { %v946_v26 = vadd.f32 %v915_v12, %v848_v23  ;;  %v851_v30 = vadd.f32 %v1277_v25, %v740_v24  ;;  %v979_v43 = vmul.f32 %v948_v33, %v948_v33  ;;  %v957_v53 = vsel %vm766_vm5, %v948_v33, 0.0 }
  0xf9   : > { %v820_v31 = vpop.f32.mrf.mxu0 }
  0xfa   : > { %1007 = vxpose.xlu0.b32.start [1/8] (short) (narrow) %v946_v26, 8  ;;  %v849_v34 = vadd.f32 %v820_v31, %v732_v27  ;;  %v977_v36 = vmul.f32 %v946_v26, %v946_v26  ;;  %v949_v38 = vadd.f32 %v1287_v57, %v851_v30  ;;  %v954_v45 = vsel %vm766_vm5, %v946_v26, 0.0 }
  0xfb   : > { %v1280_v35 = vpop.f32.mrf.mxu0  ;;  %v988_v29 = vsel %vm766_vm5, %v979_v43, 0.0 }
  0xfc   : > { %v947_v39 = vadd.f32 %v918_v17, %v849_v34  ;;  %v854_v49 = vadd.f32 %v1280_v35, %v753_v37  ;;  %v985_v54 = vsel %vm766_vm5, %v977_v36, 0.0  ;;  %v980_v56 = vmul.f32 %v949_v38, %v949_v38 }
  0xfd   : > { %v833_v40 = vpop.f32.mrf.mxu0  ;;  %v959_v0 = vsel %vm766_vm5, %v949_v38, 0.0 }
  0xfe   : > { %v852_v44 = vadd.f32 %v833_v40, %v745_v2  ;;  %v955_v46 = vsel %vm766_vm5, %v947_v39, 0.0  ;;  %v978_v48 = vmul.f32 %v947_v39, %v947_v39  ;;  %1008 = vxpose.xlu0.b32.cont [2/8] (short) (narrow) %v947_v39, 8  ;;  %v952_v1 = vadd.f32 %v1290_v21, %v854_v49 }
  0xff   : > { %v1281_v50 = vpop.f32.mrf.mxu0  ;;  %v956_v55 = vadd.f32 %v955_v46, %v954_v45  ;;  %v990_v7 = vsel %vm766_vm5, %v980_v56, 0.0 }
 0x100   : > { %v986_v58 = vsel %vm766_vm5, %v978_v48, 0.0  ;;  %v855_v59 = vadd.f32 %v1281_v50, %v756_v42  ;;  %v950_v60 = vadd.f32 %v931_v32, %v852_v44  ;;  %v983_v13 = vmul.f32 %v952_v1, %v952_v1 }
 0x101   : > { %v836_v61 = vpop.f32.mrf.mxu0  ;;  %v987_v5 = vadd.f32 %v986_v58, %v985_v54  ;;  %v958_v6 = vadd.f32 %v957_v53, %v956_v55  ;;  %v965_v17 = vsel %vm766_vm5, %v952_v1, 0.0 }
 0x102   : > { %v853_v63 = vadd.f32 %v836_v61, %v748_v51  ;;  %v981_v3 = vmul.f32 %v950_v60, %v950_v60  ;;  %1009 = vxpose.xlu0.b32.cont [3/8] (short) (narrow) %v948_v33, 8  ;;  %v961_v47 = vsel %vm766_vm5, %v950_v60, 0.0  ;;  %v953_v52 = vadd.f32 %v1291_v41, %v855_v59 }
 0x103   : > { %v960_v4 = vadd.f32 %v959_v0, %v958_v6  ;;  %v989_v11 = vadd.f32 %v988_v29, %v987_v5  ;;  %v996_v21 = vsel %vm766_vm5, %v983_v13, 0.0 }
 0x104   : > { %v951_v28 = vadd.f32 %v934_v62, %v853_v63  ;;  %v992_v14 = vsel %vm766_vm5, %v981_v3, 0.0  ;;  %v984_v18 = vmul.f32 %v953_v52, %v953_v52  ;;  %v967_v22 = vsel %vm766_vm5, %v953_v52, 0.0 }
 0x105   : > { %v962_v8 = vadd.f32 %v961_v47, %v960_v4  ;;  %v991_v9 = vadd.f32 %v990_v7, %v989_v11 }
 0x106   : > { %v963_v10 = vsel %vm766_vm5, %v951_v28, 0.0  ;;  %v982_v12 = vmul.f32 %v951_v28, %v951_v28  ;;  %1010 = vxpose.xlu0.b32.cont [4/8] (short) (narrow) %v949_v38, 8  ;;  %v998_v25 = vsel %vm766_vm5, %v984_v18, 0.0 }
 0x107   : > { %v993_v57 = vadd.f32 %v992_v14, %v991_v9  ;;  %v964_v15 = vadd.f32 %v963_v10, %v962_v8 }
 0x108   : > { %v994_v16 = vsel %vm766_vm5, %v982_v12, 0.0 }
 0x109   : > { %v966_v19 = vadd.f32 %v965_v17, %v964_v15  ;;  %v995_v20 = vadd.f32 %v994_v16, %v993_v57 }
 0x10a   : > { %1011 = vxpose.xlu0.b32.cont [5/8] (short) (narrow) %v950_v60, 8 }
 0x10b   : > { %v968_v23 = vadd.f32 %v967_v22, %v966_v19  ;;  %v997_v24 = vadd.f32 %v996_v21, %v995_v20 }
 0x10d   : > { %v969_v26 = vrot.slane %v968_v23, 4  ;;  %v999_v27 = vadd.f32 %v998_v25, %v997_v24 }
 0x10e   : > { %1012 = vxpose.xlu0.b32.cont [6/8] (short) (narrow) %v951_v28, 8 }
 0x10f   : > { %v970_v30 = vadd.f32 %v969_v26, %v968_v23  ;;  %v1000_v31 = vrot.slane %v999_v27, 4 }
 0x111   : > { %v971_v32 = vrot.slane %v970_v30, 2  ;;  %v1001_v33 = vadd.f32 %v1000_v31, %v999_v27 }
 0x112   : > { %1013 = vxpose.xlu0.b32.cont [7/8] (short) (narrow) %v952_v1, 8 }
 0x113   : > { %v972_v34 = vadd.f32 %v971_v32, %v970_v30  ;;  %v1002_v35 = vrot.slane %v1001_v33, 2 }
 0x115   : > { %v973_v2 = vrot.slane %v972_v34, 1  ;;  %v1003_v36 = vadd.f32 %v1002_v35, %v1001_v33 }
 0x116   : > { %1014 = vxpose.xlu0.b32.end [8/8] (short) (narrow) %v953_v52, 8 }
 0x117   : > { %v974_v37 = vadd.f32 %v973_v2, %v972_v34  ;;  %v1004_v38 = vrot.slane %v1003_v36, 1 }
 0x119   : > { %976 = vst.msk [vmem:[%s407_s28] sm:$0x1] %vm975_vm6, %v974_v37  ;;  %v1005_v39 = vadd.f32 %v1004_v38, %v1003_v36 }
 0x11b   : > { %1006 = vst.msk [vmem:[%s407_s28 + $0x1] sm:$0x1] %vm975_vm6, %v1005_v39 }
 0x176   : > { %v1023_v40 = vpop.trf.xlu0 }
 0x177   : > { %v1039_v41 = vpack.c.bf16 %v1023_v40, %v1023_v40 }
 0x179   : > { %1041 = vst.msk [vmem:[%s400_s9] sm:$0xf] %vm1040_vm7, %v1039_v41 }
 0x17a PF: > { %s18_s26 = sadd.s32 1, %s1353_s26   ;;  %s1585_s24 = smov %s1349_s25 }
 0x17b   : > { %p15_p5 = scmp.ge.s32.totalorder %s18_s26, 4   ;;  %s1586_s25 = smov %s1588_s27 }
 0x17d   :  { %17 = sbr.rel (!%p15_p5) target bundleno = 2 (0x2), region = 89 }

</bundles_post_ra>
